<compile_context>
chip_gen: v7x
topology: tpu7x:2x2x1
jax: 0.10.0
libtpu: 0.0.40
codegen_flags: <defaults>
</compile_context>

<pallas_src>
import functools

import jax
import jax.numpy as jnp
from jax.experimental import pallas as pl
from jax.experimental.pallas import tpu as pltpu


def _focal_loss_kernel(xT_ref, t_ref, a_ref, o_ref, acc_ref, *,
                       gamma, size_average, n_total, tile_n):
    # xT_ref : (C, TILE_N) logits tile (lane-dense over the batch), input dtype
    # t_ref  : (1, TILE_N) int32 targets tile
    # a_ref  : (C, 1)      float32 alpha (resident)
    # o_ref  : (1, 1)      float32 scalar loss (SMEM)
    # acc_ref: (1, TILE_N) float32 per-lane partial-sum accumulator (VMEM scratch)
    i = pl.program_id(0)

    @pl.when(i == 0)
    def _():
        acc_ref[...] = jnp.zeros_like(acc_ref)

    x = xT_ref[...].astype(jnp.float32)            # (C, TILE_N)
    t = t_ref[...]                                 # (1, TILE_N)
    a = a_ref[...].astype(jnp.float32)             # (C, 1)
    c = x.shape[0]

    # One-hot class mask along the (small) sublane class axis.
    row = jax.lax.broadcasted_iota(jnp.int32, (c, tile_n), 0)
    mask = (row == t).astype(jnp.float32)          # (C, TILE_N)

    # Numerically stable log-softmax along the class axis, then select target.
    m = jnp.max(x, axis=0, keepdims=True)                       # (1, TILE_N)
    e = jnp.exp(x - m)
    log_den = jnp.log(jnp.sum(e, axis=0, keepdims=True))        # (1, TILE_N)
    x_t = jnp.sum(x * mask, axis=0, keepdims=True)              # (1, TILE_N)
    log_p = (x_t - m) - log_den                                 # log softmax[target]
    p = jnp.exp(log_p)                                          # softmax[target]

    alpha_n = jnp.sum(a * mask, axis=0, keepdims=True)          # (1, TILE_N)

    one_minus_p = 1.0 - p
    # Integer-power fast path (gamma=2 default): repeated multiply, no exp/log.
    if float(gamma).is_integer() and 0.0 <= float(gamma) <= 16.0:
        g = int(gamma)
        if g == 0:
            focal = jnp.ones_like(one_minus_p)
        else:
            focal = one_minus_p
            for _ in range(g - 1):
                focal = focal * one_minus_p
    else:
        focal = jnp.power(one_minus_p, jnp.float32(gamma))

    loss_vec = -alpha_n * focal * log_p                         # (1, TILE_N)

    # Mask out lanes past the true batch size (padded last tile).
    col = jax.lax.broadcasted_iota(jnp.int32, (1, tile_n), 1)
    valid = (i * tile_n + col) < n_total
    loss_vec = jnp.where(valid, loss_vec, 0.0)

    acc_ref[...] += loss_vec

    @pl.when(i == pl.num_programs(0) - 1)
    def _():
        total = jnp.sum(acc_ref[...])
        if size_average:
            total = total / jnp.float32(n_total)
        o_ref[0, 0] = total


def focal_loss(inputs, targets, alpha, *, gamma=2.0, size_average=True,
               tile_n=None):
    """Pallas TPU focal loss.

    inputs : (N, C) float (f32 or bf16) logits
    targets: (N,)   int class ids
    alpha  : (C,)   float per-class weights
    """
    n, c = inputs.shape
    itemsize = jnp.dtype(inputs.dtype).itemsize

    # Tile size over the batch: multiple of 128 lanes, sized so a
    # double-buffered tile stays comfortably inside scoped VMEM on every gen
    # (v5e 16 MiB default .. v7x 64 MiB physical).
    if tile_n is None:
        budget = 8 * 1024 * 1024                      # per-buffer byte budget
        tn = budget // max(1, c * itemsize)
        tn = max(128, min(2048, (tn // 128) * 128))
        tn = min(tn, pl.cdiv(n, 128) * 128)           # don't over-tile tiny N
    else:
        tn = int(tile_n)

    n_pad = pl.cdiv(n, tn) * tn
    grid = (n_pad // tn,)

    # Lane-dense layout: batch on lanes, classes on sublanes. Keep input dtype
    # through the DMA (bf16 stays bf16); cast to f32 inside the kernel.
    xT = jnp.pad(inputs.T, ((0, 0), (0, n_pad - n)))
    t2 = jnp.pad(targets.astype(jnp.int32), (0, n_pad - n)).reshape(1, n_pad)
    a2 = alpha.reshape(c, 1).astype(jnp.float32)

    kernel = functools.partial(_focal_loss_kernel,
                               gamma=float(gamma),
                               size_average=bool(size_average),
                               n_total=n, tile_n=tn)

    # VMEM budget: double-buffered logits/targets tiles + alpha + scratch.
    block_bytes = c * tn * itemsize + tn * 4 + c * 4 + tn * 4
    vmem_limit = int(min(48 * 1024 * 1024,
                         max(16 * 1024 * 1024, 6 * block_bytes)))

    cost = pl.CostEstimate(
        flops=10 * n * c,
        transcendentals=n * (c + 3),                  # exp row + log + exp
        bytes_accessed=n * c * itemsize + n * 4 + c * 4 + 4,
    )

    out = pl.pallas_call(
        kernel,
        out_shape=jax.ShapeDtypeStruct((1, 1), jnp.float32),
        grid_spec=pltpu.PrefetchScalarGridSpec(
            num_scalar_prefetch=0,
            grid=grid,
            in_specs=[
                pl.BlockSpec((c, tn), lambda i: (0, i)),   # logits^T tile
                pl.BlockSpec((1, tn), lambda i: (0, i)),   # targets tile
                pl.BlockSpec((c, 1), lambda i: (0, 0)),    # alpha (resident)
            ],
            out_specs=pl.BlockSpec((1, 1), lambda i: (0, 0),
                                   memory_space=pltpu.MemorySpace.SMEM),
            scratch_shapes=[pltpu.VMEM((1, tn), jnp.float32)],
        ),
        compiler_params=pltpu.CompilerParams(
            dimension_semantics=("arbitrary",),        # grid axis is a reduction
            vmem_limit_bytes=vmem_limit,
        ),
        cost_estimate=cost,
    )(xT, t2, a2)
    return out[0, 0]


def _ref_focal_loss(x, t, a, gamma, size_average=True):
    p = jax.nn.softmax(x, axis=1)
    pr = p[jnp.arange(x.shape[0]), t]
    an = a[t]
    bl = -an * (1.0 - pr) ** gamma * jnp.log(pr)
    return jnp.mean(bl) if size_average else jnp.sum(bl)


if __name__ == "__main__":
    # Module defaults: class_num=2, alpha=ones(class_num, 1), gamma=2,
    # size_average=True.
    class_num = 2
    gamma = 2.0
    N = 8

    key = jax.random.PRNGKey(0)
    k1, k2, k3, k4 = jax.random.split(key, 4)
    logits = jax.random.normal(k1, (N, class_num), dtype=jnp.float32)
    targets = jax.random.randint(k2, (N,), 0, class_num, dtype=jnp.int32)
    alpha = jnp.ones((class_num,), dtype=jnp.float32)

    loss = focal_loss(logits, targets, alpha, gamma=gamma, size_average=True)
    loss = jax.block_until_ready(loss)
    ref = _ref_focal_loss(logits, targets, alpha, gamma)
    assert jnp.allclose(loss, ref, rtol=1e-5, atol=1e-6), (loss, ref)

    # Second check: batch not a multiple of the tile, moderate C, non-uniform
    # alpha -> exercises multi-step grid accumulation and padded-lane masking.
    N2, C2 = 300, 5
    logits2 = jax.random.normal(k3, (N2, C2), dtype=jnp.float32)
    targets2 = jax.random.randint(k4, (N2,), 0, C2, dtype=jnp.int32)
    alpha2 = jnp.linspace(0.5, 1.5, C2, dtype=jnp.float32)
    loss2 = jax.block_until_ready(
        focal_loss(logits2, targets2, alpha2, gamma=gamma, tile_n=128))
    ref2 = _ref_focal_loss(logits2, targets2, alpha2, gamma)
    assert jnp.allclose(loss2, ref2, rtol=1e-5, atol=1e-6), (loss2, ref2)

    print("KERNEL_OK")
</pallas_src>

<mosaic_0001>
module attributes {stable_mosaic.version = 11 : i64} {
  func.func @_focal_loss_kernel(%arg0: i32, %arg1: memref<2x128xf32, #tpu.memory_space<vmem>>, %arg2: memref<1x128xi32, #tpu.memory_space<vmem>>, %arg3: memref<2x1xf32, #tpu.memory_space<vmem>>, %arg4: memref<1x1xf32, #tpu.memory_space<smem>>, %arg5: memref<1x128xf32, #tpu.memory_space<vmem>>) attributes {dimension_semantics = [#tpu.dimension_semantics<arbitrary>], iteration_bounds = array<i64: 1>, scalar_prefetch = 0 : i64, scratch_operands = 1 : i64, tpu.core_type = #tpu.core_type<tc>, window_params = [{transform_indices = @transform_0, window_bounds = array<i64: 2, 128>}, {transform_indices = @transform_1, window_bounds = array<i64: 1, 128>}, {pipeline_mode = #tpu.pipeline_mode<synchronous>, transform_indices = @transform_2, window_bounds = array<i64: 2, 1>}, {transform_indices = @transform_3, window_bounds = array<i64: 1, 1>}]} {
    %c0_i32 = arith.constant 0 : i32
    %0 = arith.cmpi eq, %arg0, %c0_i32 : i32
    %1 = arith.extui %0 : i1 to i32
    %c0_i32_0 = arith.constant 0 : i32
    %2 = arith.cmpi ne, %1, %c0_i32_0 : i32
    scf.if %2 {
      %cst_18 = arith.constant 0.000000e+00 : f32
      %50 = vector.broadcast %cst_18 : f32 to vector<1x128xf32>
      %c0_19 = arith.constant 0 : index
      %c0_20 = arith.constant 0 : index
      %51 = vector.load %arg5[%c0_19, %c0_20] : memref<1x128xf32, #tpu.memory_space<vmem>>, vector<1x128xf32>
      tpu.vector_store %arg5[%c0_19, %c0_20], %50 {strides = array<i32>} : memref<1x128xf32, #tpu.memory_space<vmem>>, vector<1x128xf32>,
    } else {
    }
    %c0 = arith.constant 0 : index
    %c0_1 = arith.constant 0 : index
    %3 = vector.load %arg1[%c0, %c0_1] : memref<2x128xf32, #tpu.memory_space<vmem>>, vector<2x128xf32>
    %c0_2 = arith.constant 0 : index
    %c0_3 = arith.constant 0 : index
    %4 = vector.load %arg2[%c0_2, %c0_3] : memref<1x128xi32, #tpu.memory_space<vmem>>, vector<1x128xi32>
    %c0_4 = arith.constant 0 : index
    %c0_5 = arith.constant 0 : index
    %5 = vector.load %arg3[%c0_4, %c0_5] : memref<2x1xf32, #tpu.memory_space<vmem>>, vector<2x1xf32>
    %6 = tpu.iota {dimensions = array<i32: 0>} : vector<2x128xi32>
    %7 = vector.broadcast %4 : vector<1x128xi32> to vector<2x128xi32>
    %8 = arith.cmpi eq, %6, %7 : vector<2x128xi32>
    %9 = arith.extui %8 : vector<2x128xi1> to vector<2x128xi32>
    %10 = arith.sitofp %9 : vector<2x128xi32> to vector<2x128xf32>
    %cst = arith.constant dense<0xFF800000> : vector<128xf32>
    %11 = vector.multi_reduction <maximumf>, %3, %cst [0] : vector<2x128xf32> to vector<128xf32>
    %12 = vector.shape_cast %11 : vector<128xf32> to vector<1x128xf32>
    %13 = vector.broadcast %12 : vector<1x128xf32> to vector<2x128xf32>
    %14 = arith.subf %3, %13 : vector<2x128xf32>
    %15 = math.exp %14 : vector<2x128xf32>
    %cst_6 = arith.constant dense<0.000000e+00> : vector<128xf32>
    %16 = vector.multi_reduction <add>, %15, %cst_6 [0] : vector<2x128xf32> to vector<128xf32>
    %17 = vector.shape_cast %16 : vector<128xf32> to vector<1x128xf32>
    %18 = math.log %17 : vector<1x128xf32>
    %19 = arith.mulf %3, %10 : vector<2x128xf32>
    %cst_7 = arith.constant dense<0.000000e+00> : vector<128xf32>
    %20 = vector.multi_reduction <add>, %19, %cst_7 [0] : vector<2x128xf32> to vector<128xf32>
    %21 = vector.shape_cast %20 : vector<128xf32> to vector<1x128xf32>
    %22 = arith.subf %21, %12 : vector<1x128xf32>
    %23 = arith.subf %22, %18 : vector<1x128xf32>
    %24 = math.exp %23 : vector<1x128xf32>
    %25 = vector.broadcast %5 : vector<2x1xf32> to vector<2x128xf32>
    %26 = arith.mulf %25, %10 : vector<2x128xf32>
    %cst_8 = arith.constant dense<0.000000e+00> : vector<128xf32>
    %27 = vector.multi_reduction <add>, %26, %cst_8 [0] : vector<2x128xf32> to vector<128xf32>
    %28 = vector.shape_cast %27 : vector<128xf32> to vector<1x128xf32>
    %cst_9 = arith.constant 1.000000e+00 : f32
    %29 = vector.broadcast %cst_9 : f32 to vector<1x128xf32>
    %30 = arith.subf %29, %24 : vector<1x128xf32>
    %31 = arith.mulf %30, %30 : vector<1x128xf32>
    %cst_10 = arith.constant 0.000000e+00 : f32
    %32 = vector.broadcast %cst_10 : f32 to vector<1x128xf32>
    %33 = arith.subf %32, %28 : vector<1x128xf32>
    %34 = arith.mulf %33, %31 : vector<1x128xf32>
    %35 = arith.mulf %34, %23 : vector<1x128xf32>
    %36 = tpu.iota {dimensions = array<i32: 1>} : vector<1x128xi32>
    %c128_i32 = arith.constant 128 : i32
    %37 = arith.muli %arg0, %c128_i32 : i32
    %38 = vector.broadcast %37 : i32 to vector<1x128xi32>
    %39 = arith.addi %38, %36 : vector<1x128xi32>
    %c8_i32 = arith.constant 8 : i32
    %40 = vector.broadcast %c8_i32 : i32 to vector<1x128xi32>
    %41 = arith.cmpi slt, %39, %40 : vector<1x128xi32>
    %cst_11 = arith.constant 0.000000e+00 : f32
    %42 = vector.broadcast %cst_11 : f32 to vector<1x128xf32>
    %43 = arith.select %41, %35, %42 : vector<1x128xi1>, vector<1x128xf32>
    %c0_12 = arith.constant 0 : index
    %c0_13 = arith.constant 0 : index
    %44 = vector.load %arg5[%c0_12, %c0_13] : memref<1x128xf32, #tpu.memory_space<vmem>>, vector<1x128xf32>
    %45 = arith.addf %44, %43 : vector<1x128xf32>
    %c0_14 = arith.constant 0 : index
    %c0_15 = arith.constant 0 : index
    %46 = vector.load %arg5[%c0_14, %c0_15] : memref<1x128xf32, #tpu.memory_space<vmem>>, vector<1x128xf32>
    tpu.vector_store %arg5[%c0_14, %c0_15], %45 {strides = array<i32>} : memref<1x128xf32, #tpu.memory_space<vmem>>, vector<1x128xf32>,
    %c0_i32_16 = arith.constant 0 : i32
    %47 = arith.cmpi eq, %arg0, %c0_i32_16 : i32
    %48 = arith.extui %47 : i1 to i32
    %c0_i32_17 = arith.constant 0 : i32
    %49 = arith.cmpi ne, %48, %c0_i32_17 : i32
    scf.if %49 {
      %c0_18 = arith.constant 0 : index
      %c0_19 = arith.constant 0 : index
      %50 = vector.load %arg5[%c0_18, %c0_19] : memref<1x128xf32, #tpu.memory_space<vmem>>, vector<1x128xf32>
      %51 = vector.shape_cast %50 : vector<1x128xf32> to vector<1x1x128xf32>
      %cst_20 = arith.constant dense<0.000000e+00> : vector<1xf32>
      %52 = vector.multi_reduction <add>, %51, %cst_20 [1, 2] : vector<1x1x128xf32> to vector<1xf32>
      %53 = vector.shape_cast %52 : vector<1xf32> to vector<1x1x1xf32>
      %54 = vector.extract %53[0, 0, 0] : f32 from vector<1x1x1xf32>
      %cst_21 = arith.constant 8.000000e+00 : f32
      %55 = arith.divf %54, %cst_21 : f32
      %c0_22 = arith.constant 0 : index
      %c0_23 = arith.constant 0 : index
      %56 = memref.load %arg4[%c0_22, %c0_23] : memref<1x1xf32, #tpu.memory_space<smem>>
      memref.store %55, %arg4[%c0_22, %c0_23] : memref<1x1xf32, #tpu.memory_space<smem>>
    } else {
    }
    return
  }
  func.func @transform_0(%arg0: i32) -> (i32, i32) {
    %c0_i32 = arith.constant 0 : i32
    %c0_i32_0 = arith.constant 0 : i32
    return %c0_i32, %arg0 : i32, i32
  }
  func.func @transform_1(%arg0: i32) -> (i32, i32) {
    %c0_i32 = arith.constant 0 : i32
    %c0_i32_0 = arith.constant 0 : i32
    return %c0_i32, %arg0 : i32, i32
  }
  func.func @transform_2(%arg0: i32) -> (i32, i32) {
    %c0_i32 = arith.constant 0 : i32
    %c0_i32_0 = arith.constant 0 : i32
    %c0_i32_1 = arith.constant 0 : i32
    return %c0_i32, %c0_i32_0 : i32, i32
  }
  func.func @transform_3(%arg0: i32) -> (i32, i32) {
    %c0_i32 = arith.constant 0 : i32
    %c0_i32_0 = arith.constant 0 : i32
    %c0_i32_1 = arith.constant 0 : i32
    return %c0_i32, %c0_i32_0 : i32, i32
  }
}

</mosaic_0001>

<bundles_post_ra>
// kernel: tpu_custom_call.1
= control target key start
LH: loop header
LB: loop body
LE: loop exit
PB: predicated region body
PF: predicated region fallthrough
CT: control target
= control target key end

     0   :  { %v151_v1 = vmov 0   ;;  %v152_v2 = vmov 0.0   ;;  %s199_s0 = inlined_call_operand.vmem [shape: f32[2,128], index: 0, kind: input, shape index: {}]   ;;  %s200_s1 = inlined_call_operand.vmem [shape: s32[1,128], index: 1, kind: input, shape index: {}]   ;;  %s201_s2 = inlined_call_operand.vmem [shape: f32[2,1], index: 2, kind: input, shape index: {}]   ;;  %s202_s3 = inlined_call_operand.hbm [shape: f32[1,1], index: 3, kind: output, shape index: {}]  }
   0x1   :  { %v22_v0 = vld [vmem:[%s201_s2] sm:$0x3]  ;;  %132 = vset.pattern.permute.xlu0 %v151_v1  ;;  %19 = vst [vmem:[#allocation2] sm:$0x1] %v152_v2 }
   0x2   :  { %8 = vsyncpa [#allocation4], 0  ;;  %66 = vperm.xlu0 %132, %v22_v0   ;;  %vm32_vm0 = vcmask 1041408   ;;  %v20_v3 = vld [vmem:[%s199_s0] sm:$0x3]  ;;  %v23_v13 = vlaneseq  ;;  %vm96_vm3 = vcmask 1040384  }
   0x3   :  { %v33_v4 = vsel %vm32_vm0, %v20_v3, -inf  ;;  %v125_v16 = vld [vmem:[%s200_s1] ss:$0 sm:$0xff]  ;;  %s139_s19 = scalar_lea.hbm %s202_s3, 16 }
   0x4   :  { %v34_v5 = vrot.slane %v33_v4, 4  ;;  %v24_v15 = vshrl.u32 %v23_v13, 7  ;;  %v83_v50 = vand.u32 127, %v23_v13  ;;  %p140_p0 = scmp.ne.s32.totalorder %s202_s3, %s139_s19  ;;  %p143_p1 = scmp.lt.u32.totalorder %s139_s19, %s202_s3 }
   0x6   :  { %v35_v6 = vmax.f32 %v33_v4, %v34_v5  ;;  %vm29_vm1 = vcmp.eq.s32.totalorder %v24_v15, %v125_v16  ;;  %vm87_vm2 = vcmp.lt.s32.totalorder %v83_v50, 8  ;;  %p145_p2 = pnand %p143_p1, %p140_p0 }
   0x7   :  { %v126_v19 = vsel %vm29_vm1, 1.0, %v152_v2 }
   0x8   :  { %v36_v7 = vrot.slane %v35_v6, 2  ;;  %v52_v21 = vmul.f32 %v126_v19, %v20_v3  ;;  %v89_v54 = vld [vmem:[#allocation2] sm:$0x1] }
   0xa   :  { %v37_v8 = vmax.f32 %v35_v6, %v36_v7  ;;  %v53_v23 = vsel %vm32_vm0, %v52_v21, 0.0 }
   0xb   :  { %v54_v25 = vrot.slane %v53_v23, 4 }
   0xc   :  { %v38_v9 = vrot.slane %v37_v8, 1 }
   0xd   :  { %v55_v27 = vadd.f32 %v54_v25, %v53_v23 }
   0xe   :  { %v39_v10 = vmax.f32 %v37_v8, %v38_v9 }
   0xf   :  { %v56_v29 = vrot.slane %v55_v27, 2 }
  0x10   :  { %v40_v11 = vsub.f32 %v20_v3, %v39_v10 }
  0x11   :  { %v57_v30 = vadd.f32 %v56_v29, %v55_v27 }
  0x12   :  { %v41_v12 = vmul.f32 1.442695, %v40_v11 }
  0x13   :  { %v58_v31 = vrot.slane %v57_v30, 1 }
  0x14   :  { %133 = vpow2.f32 %v41_v12 }
  0x15   :  { %v59_v32 = vadd.f32 %v58_v31, %v57_v30 }
  0x17   :  { %v60_v35 = vsub.f32 %v59_v32, %v39_v10 }
  0x1e   :  { %v134_v14 = vpop.eup %133 }
  0x1f   :  { %v43_v17 = vsel %vm32_vm0, %v134_v14, 0.0 }
  0x20   :  { %v44_v18 = vrot.slane %v43_v17, 4 }
  0x22   :  { %v45_v20 = vadd.f32 %v44_v18, %v43_v17 }
  0x24   :  { %v46_v22 = vrot.slane %v45_v20, 2 }
  0x26   :  { %v47_v24 = vadd.f32 %v46_v22, %v45_v20 }
  0x28   :  { %v48_v26 = vrot.slane %v47_v24, 1 }
  0x2a   :  { %v49_v28 = vadd.f32 %v48_v26, %v47_v24 }
  0x2c   :  { %135 = vlog2.f32 %v49_v28 }
  0x36   :  { %v136_v33 = vpop.eup %135 }
  0x37   :  { %v51_v34 = vmul.f32 0.6931472, %v136_v33 }
  0x39   :  { %v61_v36 = vsub.f32 %v60_v35, %v51_v34 }
  0x3b   :  { %v62_v37 = vmul.f32 1.442695, %v61_v36 }
  0x3d   :  { %137 = vpow2.f32 %v62_v37 }
  0x47   :  { %v138_v43 = vpop.eup %137 }
  0x48   :  { %v77_v46 = vsub.f32 1.0, %v138_v43 }
  0x4a   :  { %v78_v49 = vmul.f32 %v77_v46, %v77_v46 }
  0x81   :  { %v67_v38 = vpop.permute.xlu0 %66 }
  0x82   :  { %v69_v39 = vmul.f32 %v126_v19, %v67_v38 }
  0x84   :  { %v70_v40 = vsel %vm32_vm0, %v69_v39, 0.0 }
  0x85   :  { %v71_v41 = vrot.slane %v70_v40, 4 }
  0x87   :  { %v72_v42 = vadd.f32 %v71_v41, %v70_v40 }
  0x89   :  { %v73_v44 = vrot.slane %v72_v42, 2 }
  0x8b   :  { %v74_v45 = vadd.f32 %v73_v44, %v72_v42 }
  0x8d   :  { %v75_v47 = vrot.slane %v74_v45, 1 }
  0x8f   :  { %v76_v48 = vadd.f32 %v75_v47, %v74_v45 }
  0x91   :  { %v79_v51 = vsub.f32 0.0, %v76_v48 }
  0x93   :  { %v80_v52 = vmul.f32 %v79_v51, %v78_v49 }
  0x95   :  { %v81_v53 = vmul.f32 %v80_v52, %v61_v36 }
  0x97   :  { %v88_v55 = vsel %vm87_vm2, %v81_v53, 0.0 }
  0x98   :  { %v90_v56 = vadd.f32 %v89_v54, %v88_v55 }
  0x9a   :  { %91 = vst [vmem:[#allocation2] sm:$0x1] %v90_v56 }
  0xa1   :  { %v95_v57 = vld [vmem:[#allocation2] sm:$0x1] }
  0xa2   :  { %v97_v58 = vsel %vm96_vm3, %v95_v57, 0.0 }
  0xa3   :  { %98 = vadd.xlane.f32.xlu0 %v97_v58 }
 0x130   :  { %v99_v59 = vpop.xlane.xlu0 %98 }
 0x131   :  { %v100_v60 = vrot.slane %v99_v59, 4 }
 0x133   :  { %v101_v61 = vadd.f32 %v100_v60, %v99_v59 }
 0x135   :  { %v102_v62 = vrot.slane %v101_v61, 2 }
 0x137   :  { %v103_v63 = vadd.f32 %v102_v62, %v101_v61 }
 0x139   :  { %v104_v0 = vrot.slane %v103_v63, 1 }
 0x13b   :  { %v105_v1 = vadd.f32 %v104_v0, %v103_v63 }
 0x13d   :  { %127 = vpush %v105_v1 }
 0x16e   :  { %s128_s0 = spop %127 }
 0x16f   :  { %s109_s1 = smul.f32 0.125, %s128_s0 }
 0x171   :  { %111 = sst [smem:[#allocation3]] %s109_s1 }
 0x172   :  { %148 = shalt.err (!%p145_p2)
}
 0x173   :  { %s153_s24 = smov [#allocation3]  }
 0x174   :  { %119 = dma.smem_to_hbm %s153_s24, 16, %s202_s3, [#allocation4]  }
 0x175   :  { %149 = dma.done.wait [#allocation4], 16  }
 0x176   :  { %150 = vsyncadd [#allocation4], 4294967280 }
 0x177   :  { %123 = sfence }
 0x178   :  { %124 = vsyncpa [#allocation4], 1 }

</bundles_post_ra>
